<compile_context>
chip_gen: v5e
topology: v5e:2x2
jax: 0.10.0
libtpu: 0.0.40
codegen_flags: <defaults>
</compile_context>

<pallas_src>
import jax
import jax.numpy as jnp
import numpy as np
from jax.experimental import pallas as pl
from jax.experimental.pallas import tpu as pltpu


def motion_aware_attention(x, params):
    """x: (B, C, H, W) float32 (NCHW).  Returns (B, Cout, H, W) float32."""
    B, C, H, W = x.shape
    HW = H * W
    Cout = params["w_out"].shape[0]

    x_flat = x.reshape(B, C, HW)

    # ---- host-side constants (tiny) -------------------------------------
    # Boundary masks for the 9 conv taps (tap k = kh*3 + kw, dh=kh-1, dw=kw-1).
    rows = np.arange(HW) // W
    cols = np.arange(HW) % W
    taps = [(dh, dw) for dh in (-1, 0, 1) for dw in (-1, 0, 1)]
    masks_np = np.stack(
        [((rows + dh >= 0) & (rows + dh < H) & (cols + dw >= 0) & (cols + dw < W))
         for dh, dw in taps]
    ).astype(np.float32)                                   # (9, HW)
    masks = jnp.asarray(masks_np)

    # Lane-roll amounts so that shifted[p] == x[p + dh*W + dw].
    shifts = tuple((-(dh * W + dw)) % HW for dh, dw in taps)

    # 3x3 conv weights as (9, Cout, C) bf16 (tap-major), cast once on host.
    w_taps = jnp.transpose(params["w_out"], (2, 3, 0, 1)).reshape(9, Cout, C)
    w_taps = w_taps.astype(jnp.bfloat16)

    # Pack small per-channel params into single operands (fewer DMAs/buffers).
    vecs = jnp.stack([params["w_mask"].reshape(C, 1),       # conv_mask (1,C,1,1)
                      params["ln_gamma"].reshape(C, 1),
                      params["ln_beta"].reshape(C, 1)])     # (3, C, 1)
    w12 = jnp.stack([params["w1"], params["w2"]])           # (2, C, C)

    # ---- fused kernel ----------------------------------------------------
    def kernel(x_ref, masks_ref, vecs_ref, w12_ref, wt_ref, out_ref):
        xb = x_ref[0]                                               # (C, HW) f32
        wm = vecs_ref[0]                                            # (C, 1)
        g = vecs_ref[1]
        b = vecs_ref[2]

        # spatial_pool: softmax over HW of (w_mask . x); context = x @ probs
        logits = jnp.sum(xb * wm, axis=0, keepdims=True)            # (1, HW)
        m = jnp.max(logits, axis=-1, keepdims=True)
        p = jnp.exp(logits - m)                                     # (1, HW)
        ctx = jnp.sum(xb * p, axis=-1, keepdims=True)               # (C, 1) unnorm.
        inv = pl.reciprocal(jnp.sum(p, axis=-1, keepdims=True), approx=True)
        context = ctx * inv                                         # (C, 1)

        # channel_mul_conv: 1x1 -> LayerNorm([C,1,1]) -> ReLU -> 1x1 -> sigmoid
        y = jnp.dot(w12_ref[0], context, preferred_element_type=jnp.float32)
        mu = jnp.mean(y, keepdims=True)
        var = jnp.mean((y - mu) ** 2, keepdims=True)
        y = (y - mu) * jax.lax.rsqrt(var + 1e-5)
        y = y * g + b
        y = jnp.maximum(y, 0.0)
        y = jnp.dot(w12_ref[1], y, preferred_element_type=jnp.float32)
        attn = jax.nn.sigmoid(y)                                    # (C, 1)

        # motion_feature = x * attn (spatially constant scale, so it commutes
        # with the conv shifts); 3x3 SAME conv as 9 shifted accumulations.
        scaled = xb * attn                                          # (C, HW) f32
        msk = masks_ref[...]                                        # (9, HW) f32
        wt = wt_ref[...]                                            # (9, Cout, C) bf16

        acc = jnp.zeros((Cout, HW), jnp.float32)
        for k, s in enumerate(shifts):
            shifted = scaled if s == 0 else pltpu.roll(scaled, s, axis=1)
            masked = (shifted * msk[k:k + 1, :]).astype(jnp.bfloat16)
            acc = acc + jnp.dot(wt[k], masked,
                                preferred_element_type=jnp.float32)
        out_ref[0] = acc.astype(out_ref.dtype)

    out = pl.pallas_call(
        kernel,
        out_shape=jax.ShapeDtypeStruct((B, Cout, HW), jnp.float32),
        grid_spec=pltpu.PrefetchScalarGridSpec(
            num_scalar_prefetch=0,
            grid=(B,),
            in_specs=[
                pl.BlockSpec((1, C, HW), lambda bi: (bi, 0, 0)),
                pl.BlockSpec((9, HW), lambda bi: (0, 0)),
                pl.BlockSpec((3, C, 1), lambda bi: (0, 0, 0)),
                pl.BlockSpec((2, C, C), lambda bi: (0, 0, 0)),
                pl.BlockSpec((9, Cout, C), lambda bi: (0, 0, 0)),
            ],
            out_specs=pl.BlockSpec((1, Cout, HW), lambda bi: (bi, 0, 0)),
        ),
        compiler_params=pltpu.CompilerParams(
            dimension_semantics=("parallel",),
            vmem_limit_bytes=32 * 1024 * 1024,
        ),
    )(x_flat, masks, vecs, w12, w_taps)

    return out.reshape(B, Cout, H, W)


# --------------------------------------------------------------------------
# Pure-JAX reference (mirrors the PyTorch forward) for validation.
# --------------------------------------------------------------------------
def reference(x, params):
    B, C, H, W = x.shape
    wm = params["w_mask"].reshape(C)
    logits = jnp.einsum("c,bchw->bhw", wm, x).reshape(B, H * W)
    probs = jax.nn.softmax(logits, axis=-1)
    context = jnp.einsum("bcn,bn->bc", x.reshape(B, C, -1), probs)
    y = context @ params["w1"].T
    mean = y.mean(axis=1, keepdims=True)
    var = ((y - mean) ** 2).mean(axis=1, keepdims=True)
    y = (y - mean) / jnp.sqrt(var + 1e-5)
    y = y * params["ln_gamma"][None, :] + params["ln_beta"][None, :]
    y = jnp.maximum(y, 0.0)
    y = y @ params["w2"].T
    attn = jax.nn.sigmoid(y)
    motion = x * attn[:, :, None, None]
    return jax.lax.conv_general_dilated(
        motion, params["w_out"], window_strides=(1, 1), padding="SAME",
        dimension_numbers=("NCHW", "OIHW", "NCHW"))


def init_params(key, C, Cout):
    ks = jax.random.split(key, 6)
    s = 0.1
    return {
        "w_mask": jax.random.normal(ks[0], (1, C), jnp.float32) * s,          # conv_mask (1,C,1,1)
        "w1": jax.random.normal(ks[1], (C, C), jnp.float32) * s,              # channel_mul_conv[0]
        "ln_gamma": 1.0 + jax.random.normal(ks[2], (C,), jnp.float32) * s,    # LayerNorm weight (C,1,1)
        "ln_beta": jax.random.normal(ks[3], (C,), jnp.float32) * s,           # LayerNorm bias (C,1,1)
        "w2": jax.random.normal(ks[4], (C, C), jnp.float32) * s,              # channel_mul_conv[3]
        "w_out": jax.random.normal(ks[5], (Cout, C, 3, 3), jnp.float32) * s,  # output_layer conv
    }


if __name__ == "__main__":
    B, C_in, C_out, H, W = 2, 4, 8, 16, 16
    key = jax.random.PRNGKey(0)
    kx, kp = jax.random.split(key)
    x = jax.random.normal(kx, (B, C_in, H, W), jnp.float32)
    params = init_params(kp, C_in, C_out)

    out = motion_aware_attention(x, params)
    out = jax.block_until_ready(out)

    ref = jax.block_until_ready(reference(x, params))
    assert out.shape == (B, C_out, H, W)
    # Tolerance accounts for bf16 MXU operands + approx reciprocal (f32 accumulate).
    np.testing.assert_allclose(np.asarray(out), np.asarray(ref), rtol=2e-2, atol=2e-2)

    print("KERNEL_OK")
</pallas_src>

<mosaic_0001>
module attributes {stable_mosaic.version = 11 : i64} {
  func.func @kernel(%arg0: i32, %arg1: memref<1x4x256xf32, #tpu.memory_space<vmem>>, %arg2: memref<9x256xf32, #tpu.memory_space<vmem>>, %arg3: memref<3x4x1xf32, #tpu.memory_space<vmem>>, %arg4: memref<2x4x4xf32, #tpu.memory_space<vmem>>, %arg5: memref<9x8x4xbf16, #tpu.memory_space<vmem>>, %arg6: memref<1x8x256xf32, #tpu.memory_space<vmem>>) attributes {dimension_semantics = [#tpu.dimension_semantics<parallel>], iteration_bounds = array<i64: 2>, scalar_prefetch = 0 : i64, scratch_operands = 0 : i64, tpu.core_type = #tpu.core_type<tc>, window_params = [{transform_indices = @transform_0, window_bounds = array<i64: 1, 4, 256>}, {pipeline_mode = #tpu.pipeline_mode<synchronous>, transform_indices = @transform_1, window_bounds = array<i64: 9, 256>}, {pipeline_mode = #tpu.pipeline_mode<synchronous>, transform_indices = @transform_2, window_bounds = array<i64: 3, 4, 1>}, {pipeline_mode = #tpu.pipeline_mode<synchronous>, transform_indices = @transform_3, window_bounds = array<i64: 2, 4, 4>}, {pipeline_mode = #tpu.pipeline_mode<synchronous>, transform_indices = @transform_4, window_bounds = array<i64: 9, 8, 4>}, {transform_indices = @transform_5, window_bounds = array<i64: 1, 8, 256>}]} {
    %c0 = arith.constant 0 : index
    %c0_0 = arith.constant 0 : index
    %c0_1 = arith.constant 0 : index
    %0 = vector.load %arg1[%c0, %c0_0, %c0_1] : memref<1x4x256xf32, #tpu.memory_space<vmem>>, vector<1x4x256xf32>
    %1 = vector.shape_cast %0 : vector<1x4x256xf32> to vector<4x256xf32>
    %c0_2 = arith.constant 0 : index
    %c0_3 = arith.constant 0 : index
    %c0_4 = arith.constant 0 : index
    %2 = vector.load %arg3[%c0_2, %c0_3, %c0_4] : memref<3x4x1xf32, #tpu.memory_space<vmem>>, vector<1x4x1xf32>
    %3 = vector.shape_cast %2 : vector<1x4x1xf32> to vector<4x1xf32>
    %c1 = arith.constant 1 : index
    %c0_5 = arith.constant 0 : index
    %c0_6 = arith.constant 0 : index
    %4 = vector.load %arg3[%c1, %c0_5, %c0_6] : memref<3x4x1xf32, #tpu.memory_space<vmem>>, vector<1x4x1xf32>
    %5 = vector.shape_cast %4 : vector<1x4x1xf32> to vector<4x1xf32>
    %c2 = arith.constant 2 : index
    %c0_7 = arith.constant 0 : index
    %c0_8 = arith.constant 0 : index
    %6 = vector.load %arg3[%c2, %c0_7, %c0_8] : memref<3x4x1xf32, #tpu.memory_space<vmem>>, vector<1x4x1xf32>
    %7 = vector.shape_cast %6 : vector<1x4x1xf32> to vector<4x1xf32>
    %8 = vector.broadcast %3 : vector<4x1xf32> to vector<4x256xf32>
    %9 = arith.mulf %1, %8 : vector<4x256xf32>
    %cst = arith.constant dense<0.000000e+00> : vector<256xf32>
    %10 = vector.multi_reduction <add>, %9, %cst [0] : vector<4x256xf32> to vector<256xf32>
    %11 = vector.shape_cast %10 : vector<256xf32> to vector<1x256xf32>
    %cst_9 = arith.constant dense<0xFF800000> : vector<1xf32>
    %12 = vector.multi_reduction <maximumf>, %11, %cst_9 [1] : vector<1x256xf32> to vector<1xf32>
    %13 = vector.shape_cast %12 : vector<1xf32> to vector<1x1xf32>
    %14 = vector.broadcast %13 : vector<1x1xf32> to vector<1x256xf32>
    %15 = arith.subf %11, %14 : vector<1x256xf32>
    %16 = math.exp %15 : vector<1x256xf32>
    %17 = vector.broadcast %16 : vector<1x256xf32> to vector<4x256xf32>
    %18 = arith.mulf %1, %17 : vector<4x256xf32>
    %cst_10 = arith.constant dense<0.000000e+00> : vector<4xf32>
    %19 = vector.multi_reduction <add>, %18, %cst_10 [1] : vector<4x256xf32> to vector<4xf32>
    %20 = vector.shape_cast %19 : vector<4xf32> to vector<4x1xf32>
    %cst_11 = arith.constant dense<0.000000e+00> : vector<1xf32>
    %21 = vector.multi_reduction <add>, %16, %cst_11 [1] : vector<1x256xf32> to vector<1xf32>
    %22 = vector.shape_cast %21 : vector<1xf32> to vector<1x1xf32>
    %23 = tpu.reciprocal %22 {approx = true} : vector<1x1xf32> -> vector<1x1xf32>
    %24 = vector.broadcast %23 : vector<1x1xf32> to vector<4x1xf32>
    %25 = arith.mulf %20, %24 : vector<4x1xf32>
    %c0_12 = arith.constant 0 : index
    %c0_13 = arith.constant 0 : index
    %c0_14 = arith.constant 0 : index
    %26 = vector.load %arg4[%c0_12, %c0_13, %c0_14] : memref<2x4x4xf32, #tpu.memory_space<vmem>>, vector<1x4x4xf32>
    %27 = vector.shape_cast %26 : vector<1x4x4xf32> to vector<4x4xf32>
    %cst_15 = arith.constant dense<0.000000e+00> : vector<4x1xf32>
    %28 = tpu.matmul %27, %25, %cst_15 {dimension_numbers = #tpu.dot_dimension_numbers<[1], [0], [0], [1], [0, 0, 1, 1], [], []>} : vector<4x4xf32>, vector<4x1xf32>, vector<4x1xf32> -> vector<4x1xf32>
    %29 = vector.shape_cast %28 : vector<4x1xf32> to vector<1x4x1xf32>
    %cst_16 = arith.constant dense<0.000000e+00> : vector<1xf32>
    %30 = vector.multi_reduction <add>, %29, %cst_16 [1, 2] : vector<1x4x1xf32> to vector<1xf32>
    %31 = vector.shape_cast %30 : vector<1xf32> to vector<1x1x1xf32>
    %32 = vector.extract %31[0, 0, 0] : f32 from vector<1x1x1xf32>
    %33 = vector.broadcast %32 : f32 to vector<1x1xf32>
    %cst_17 = arith.constant 4.000000e+00 : f32
    %34 = vector.broadcast %cst_17 : f32 to vector<1x1xf32>
    %35 = arith.divf %33, %34 : vector<1x1xf32>
    %36 = vector.broadcast %35 : vector<1x1xf32> to vector<4x1xf32>
    %37 = arith.subf %28, %36 : vector<4x1xf32>
    %38 = arith.mulf %37, %37 : vector<4x1xf32>
    %39 = vector.shape_cast %38 : vector<4x1xf32> to vector<1x4x1xf32>
    %cst_18 = arith.constant dense<0.000000e+00> : vector<1xf32>
    %40 = vector.multi_reduction <add>, %39, %cst_18 [1, 2] : vector<1x4x1xf32> to vector<1xf32>
    %41 = vector.shape_cast %40 : vector<1xf32> to vector<1x1x1xf32>
    %42 = vector.extract %41[0, 0, 0] : f32 from vector<1x1x1xf32>
    %43 = vector.broadcast %42 : f32 to vector<1x1xf32>
    %cst_19 = arith.constant 4.000000e+00 : f32
    %44 = vector.broadcast %cst_19 : f32 to vector<1x1xf32>
    %45 = arith.divf %43, %44 : vector<1x1xf32>
    %46 = vector.broadcast %35 : vector<1x1xf32> to vector<4x1xf32>
    %47 = arith.subf %28, %46 : vector<4x1xf32>
    %cst_20 = arith.constant 9.99999974E-6 : f32
    %48 = vector.broadcast %cst_20 : f32 to vector<1x1xf32>
    %49 = arith.addf %45, %48 : vector<1x1xf32>
    %50 = math.rsqrt %49 : vector<1x1xf32>
    %51 = vector.broadcast %50 : vector<1x1xf32> to vector<4x1xf32>
    %52 = arith.mulf %47, %51 : vector<4x1xf32>
    %53 = arith.mulf %52, %5 : vector<4x1xf32>
    %54 = arith.addf %53, %7 : vector<4x1xf32>
    %cst_21 = arith.constant 0.000000e+00 : f32
    %55 = vector.broadcast %cst_21 : f32 to vector<4x1xf32>
    %56 = arith.maximumf %54, %55 : vector<4x1xf32>
    %c1_22 = arith.constant 1 : index
    %c0_23 = arith.constant 0 : index
    %c0_24 = arith.constant 0 : index
    %57 = vector.load %arg4[%c1_22, %c0_23, %c0_24] : memref<2x4x4xf32, #tpu.memory_space<vmem>>, vector<1x4x4xf32>
    %58 = vector.shape_cast %57 : vector<1x4x4xf32> to vector<4x4xf32>
    %cst_25 = arith.constant dense<0.000000e+00> : vector<4x1xf32>
    %59 = tpu.matmul %58, %56, %cst_25 {dimension_numbers = #tpu.dot_dimension_numbers<[1], [0], [0], [1], [0, 0, 1, 1], [], []>} : vector<4x4xf32>, vector<4x1xf32>, vector<4x1xf32> -> vector<4x1xf32>
    %60 = arith.negf %59 : vector<4x1xf32>
    %61 = math.exp %60 : vector<4x1xf32>
    %cst_26 = arith.constant 1.000000e+00 : f32
    %62 = vector.broadcast %cst_26 : f32 to vector<4x1xf32>
    %63 = arith.addf %62, %61 : vector<4x1xf32>
    %64 = arith.divf %62, %63 : vector<4x1xf32>
    %65 = vector.broadcast %64 : vector<4x1xf32> to vector<4x256xf32>
    %66 = arith.mulf %1, %65 : vector<4x256xf32>
    %c0_27 = arith.constant 0 : index
    %c0_28 = arith.constant 0 : index
    %67 = vector.load %arg2[%c0_27, %c0_28] : memref<9x256xf32, #tpu.memory_space<vmem>>, vector<9x256xf32>
    %c0_29 = arith.constant 0 : index
    %c0_30 = arith.constant 0 : index
    %c0_31 = arith.constant 0 : index
    %68 = vector.load %arg5[%c0_29, %c0_30, %c0_31] : memref<9x8x4xbf16, #tpu.memory_space<vmem>>, vector<9x8x4xbf16>
    %cst_32 = arith.constant 0.000000e+00 : f32
    %69 = vector.broadcast %cst_32 : f32 to vector<8x256xf32>
    %c17_i32 = arith.constant 17 : i32
    %70 = tpu.dynamic_rotate %66 by %c17_i32 dim 1 : vector<4x256xf32>, i32 -> vector<4x256xf32>
    %71 = vector.extract_strided_slice %67 {offsets = [0, 0], sizes = [1, 256], strides = [1, 1]} : vector<9x256xf32> to vector<1x256xf32>
    %72 = vector.broadcast %71 : vector<1x256xf32> to vector<4x256xf32>
    %73 = arith.mulf %70, %72 : vector<4x256xf32>
    %74 = arith.truncf %73 : vector<4x256xf32> to vector<4x256xbf16>
    %75 = vector.extract_strided_slice %68 {offsets = [0, 0, 0], sizes = [1, 8, 4], strides = [1, 1, 1]} : vector<9x8x4xbf16> to vector<1x8x4xbf16>
    %76 = vector.shape_cast %75 : vector<1x8x4xbf16> to vector<8x4xbf16>
    %cst_33 = arith.constant dense<0.000000e+00> : vector<8x256xf32>
    %77 = tpu.matmul %76, %74, %cst_33 {dimension_numbers = #tpu.dot_dimension_numbers<[1], [0], [0], [1], [0, 0, 1, 1], [], []>} : vector<8x4xbf16>, vector<4x256xbf16>, vector<8x256xf32> -> vector<8x256xf32>
    %78 = arith.addf %69, %77 : vector<8x256xf32>
    %c16_i32 = arith.constant 16 : i32
    %79 = tpu.dynamic_rotate %66 by %c16_i32 dim 1 : vector<4x256xf32>, i32 -> vector<4x256xf32>
    %80 = vector.extract_strided_slice %67 {offsets = [1, 0], sizes = [1, 256], strides = [1, 1]} : vector<9x256xf32> to vector<1x256xf32>
    %81 = vector.broadcast %80 : vector<1x256xf32> to vector<4x256xf32>
    %82 = arith.mulf %79, %81 : vector<4x256xf32>
    %83 = arith.truncf %82 : vector<4x256xf32> to vector<4x256xbf16>
    %84 = vector.extract_strided_slice %68 {offsets = [1, 0, 0], sizes = [1, 8, 4], strides = [1, 1, 1]} : vector<9x8x4xbf16> to vector<1x8x4xbf16>
    %85 = vector.shape_cast %84 : vector<1x8x4xbf16> to vector<8x4xbf16>
    %cst_34 = arith.constant dense<0.000000e+00> : vector<8x256xf32>
    %86 = tpu.matmul %85, %83, %cst_34 {dimension_numbers = #tpu.dot_dimension_numbers<[1], [0], [0], [1], [0, 0, 1, 1], [], []>} : vector<8x4xbf16>, vector<4x256xbf16>, vector<8x256xf32> -> vector<8x256xf32>
    %87 = arith.addf %78, %86 : vector<8x256xf32>
    %c15_i32 = arith.constant 15 : i32
    %88 = tpu.dynamic_rotate %66 by %c15_i32 dim 1 : vector<4x256xf32>, i32 -> vector<4x256xf32>
    %89 = vector.extract_strided_slice %67 {offsets = [2, 0], sizes = [1, 256], strides = [1, 1]} : vector<9x256xf32> to vector<1x256xf32>
    %90 = vector.broadcast %89 : vector<1x256xf32> to vector<4x256xf32>
    %91 = arith.mulf %88, %90 : vector<4x256xf32>
    %92 = arith.truncf %91 : vector<4x256xf32> to vector<4x256xbf16>
    %93 = vector.extract_strided_slice %68 {offsets = [2, 0, 0], sizes = [1, 8, 4], strides = [1, 1, 1]} : vector<9x8x4xbf16> to vector<1x8x4xbf16>
    %94 = vector.shape_cast %93 : vector<1x8x4xbf16> to vector<8x4xbf16>
    %cst_35 = arith.constant dense<0.000000e+00> : vector<8x256xf32>
    %95 = tpu.matmul %94, %92, %cst_35 {dimension_numbers = #tpu.dot_dimension_numbers<[1], [0], [0], [1], [0, 0, 1, 1], [], []>} : vector<8x4xbf16>, vector<4x256xbf16>, vector<8x256xf32> -> vector<8x256xf32>
    %96 = arith.addf %87, %95 : vector<8x256xf32>
    %c1_i32 = arith.constant 1 : i32
    %97 = tpu.dynamic_rotate %66 by %c1_i32 dim 1 : vector<4x256xf32>, i32 -> vector<4x256xf32>
    %98 = vector.extract_strided_slice %67 {offsets = [3, 0], sizes = [1, 256], strides = [1, 1]} : vector<9x256xf32> to vector<1x256xf32>
    %99 = vector.broadcast %98 : vector<1x256xf32> to vector<4x256xf32>
    %100 = arith.mulf %97, %99 : vector<4x256xf32>
    %101 = arith.truncf %100 : vector<4x256xf32> to vector<4x256xbf16>
    %102 = vector.extract_strided_slice %68 {offsets = [3, 0, 0], sizes = [1, 8, 4], strides = [1, 1, 1]} : vector<9x8x4xbf16> to vector<1x8x4xbf16>
    %103 = vector.shape_cast %102 : vector<1x8x4xbf16> to vector<8x4xbf16>
    %cst_36 = arith.constant dense<0.000000e+00> : vector<8x256xf32>
    %104 = tpu.matmul %103, %101, %cst_36 {dimension_numbers = #tpu.dot_dimension_numbers<[1], [0], [0], [1], [0, 0, 1, 1], [], []>} : vector<8x4xbf16>, vector<4x256xbf16>, vector<8x256xf32> -> vector<8x256xf32>
    %105 = arith.addf %96, %104 : vector<8x256xf32>
    %106 = vector.extract_strided_slice %67 {offsets = [4, 0], sizes = [1, 256], strides = [1, 1]} : vector<9x256xf32> to vector<1x256xf32>
    %107 = vector.broadcast %106 : vector<1x256xf32> to vector<4x256xf32>
    %108 = arith.mulf %66, %107 : vector<4x256xf32>
    %109 = arith.truncf %108 : vector<4x256xf32> to vector<4x256xbf16>
    %110 = vector.extract_strided_slice %68 {offsets = [4, 0, 0], sizes = [1, 8, 4], strides = [1, 1, 1]} : vector<9x8x4xbf16> to vector<1x8x4xbf16>
    %111 = vector.shape_cast %110 : vector<1x8x4xbf16> to vector<8x4xbf16>
    %cst_37 = arith.constant dense<0.000000e+00> : vector<8x256xf32>
    %112 = tpu.matmul %111, %109, %cst_37 {dimension_numbers = #tpu.dot_dimension_numbers<[1], [0], [0], [1], [0, 0, 1, 1], [], []>} : vector<8x4xbf16>, vector<4x256xbf16>, vector<8x256xf32> -> vector<8x256xf32>
    %113 = arith.addf %105, %112 : vector<8x256xf32>
    %c255_i32 = arith.constant 255 : i32
    %114 = tpu.dynamic_rotate %66 by %c255_i32 dim 1 : vector<4x256xf32>, i32 -> vector<4x256xf32>
    %115 = vector.extract_strided_slice %67 {offsets = [5, 0], sizes = [1, 256], strides = [1, 1]} : vector<9x256xf32> to vector<1x256xf32>
    %116 = vector.broadcast %115 : vector<1x256xf32> to vector<4x256xf32>
    %117 = arith.mulf %114, %116 : vector<4x256xf32>
    %118 = arith.truncf %117 : vector<4x256xf32> to vector<4x256xbf16>
    %119 = vector.extract_strided_slice %68 {offsets = [5, 0, 0], sizes = [1, 8, 4], strides = [1, 1, 1]} : vector<9x8x4xbf16> to vector<1x8x4xbf16>
    %120 = vector.shape_cast %119 : vector<1x8x4xbf16> to vector<8x4xbf16>
    %cst_38 = arith.constant dense<0.000000e+00> : vector<8x256xf32>
    %121 = tpu.matmul %120, %118, %cst_38 {dimension_numbers = #tpu.dot_dimension_numbers<[1], [0], [0], [1], [0, 0, 1, 1], [], []>} : vector<8x4xbf16>, vector<4x256xbf16>, vector<8x256xf32> -> vector<8x256xf32>
    %122 = arith.addf %113, %121 : vector<8x256xf32>
    %c241_i32 = arith.constant 241 : i32
    %123 = tpu.dynamic_rotate %66 by %c241_i32 dim 1 : vector<4x256xf32>, i32 -> vector<4x256xf32>
    %124 = vector.extract_strided_slice %67 {offsets = [6, 0], sizes = [1, 256], strides = [1, 1]} : vector<9x256xf32> to vector<1x256xf32>
    %125 = vector.broadcast %124 : vector<1x256xf32> to vector<4x256xf32>
    %126 = arith.mulf %123, %125 : vector<4x256xf32>
    %127 = arith.truncf %126 : vector<4x256xf32> to vector<4x256xbf16>
    %128 = vector.extract_strided_slice %68 {offsets = [6, 0, 0], sizes = [1, 8, 4], strides = [1, 1, 1]} : vector<9x8x4xbf16> to vector<1x8x4xbf16>
    %129 = vector.shape_cast %128 : vector<1x8x4xbf16> to vector<8x4xbf16>
    %cst_39 = arith.constant dense<0.000000e+00> : vector<8x256xf32>
    %130 = tpu.matmul %129, %127, %cst_39 {dimension_numbers = #tpu.dot_dimension_numbers<[1], [0], [0], [1], [0, 0, 1, 1], [], []>} : vector<8x4xbf16>, vector<4x256xbf16>, vector<8x256xf32> -> vector<8x256xf32>
    %131 = arith.addf %122, %130 : vector<8x256xf32>
    %c240_i32 = arith.constant 240 : i32
    %132 = tpu.dynamic_rotate %66 by %c240_i32 dim 1 : vector<4x256xf32>, i32 -> vector<4x256xf32>
    %133 = vector.extract_strided_slice %67 {offsets = [7, 0], sizes = [1, 256], strides = [1, 1]} : vector<9x256xf32> to vector<1x256xf32>
    %134 = vector.broadcast %133 : vector<1x256xf32> to vector<4x256xf32>
    %135 = arith.mulf %132, %134 : vector<4x256xf32>
    %136 = arith.truncf %135 : vector<4x256xf32> to vector<4x256xbf16>
    %137 = vector.extract_strided_slice %68 {offsets = [7, 0, 0], sizes = [1, 8, 4], strides = [1, 1, 1]} : vector<9x8x4xbf16> to vector<1x8x4xbf16>
    %138 = vector.shape_cast %137 : vector<1x8x4xbf16> to vector<8x4xbf16>
    %cst_40 = arith.constant dense<0.000000e+00> : vector<8x256xf32>
    %139 = tpu.matmul %138, %136, %cst_40 {dimension_numbers = #tpu.dot_dimension_numbers<[1], [0], [0], [1], [0, 0, 1, 1], [], []>} : vector<8x4xbf16>, vector<4x256xbf16>, vector<8x256xf32> -> vector<8x256xf32>
    %140 = arith.addf %131, %139 : vector<8x256xf32>
    %c239_i32 = arith.constant 239 : i32
    %141 = tpu.dynamic_rotate %66 by %c239_i32 dim 1 : vector<4x256xf32>, i32 -> vector<4x256xf32>
    %142 = vector.extract_strided_slice %67 {offsets = [8, 0], sizes = [1, 256], strides = [1, 1]} : vector<9x256xf32> to vector<1x256xf32>
    %143 = vector.broadcast %142 : vector<1x256xf32> to vector<4x256xf32>
    %144 = arith.mulf %141, %143 : vector<4x256xf32>
    %145 = arith.truncf %144 : vector<4x256xf32> to vector<4x256xbf16>
    %146 = vector.extract_strided_slice %68 {offsets = [8, 0, 0], sizes = [1, 8, 4], strides = [1, 1, 1]} : vector<9x8x4xbf16> to vector<1x8x4xbf16>
    %147 = vector.shape_cast %146 : vector<1x8x4xbf16> to vector<8x4xbf16>
    %cst_41 = arith.constant dense<0.000000e+00> : vector<8x256xf32>
    %148 = tpu.matmul %147, %145, %cst_41 {dimension_numbers = #tpu.dot_dimension_numbers<[1], [0], [0], [1], [0, 0, 1, 1], [], []>} : vector<8x4xbf16>, vector<4x256xbf16>, vector<8x256xf32> -> vector<8x256xf32>
    %149 = arith.addf %140, %148 : vector<8x256xf32>
    %c0_42 = arith.constant 0 : index
    %c0_43 = arith.constant 0 : index
    %c0_44 = arith.constant 0 : index
    %150 = vector.load %arg6[%c0_42, %c0_43, %c0_44] : memref<1x8x256xf32, #tpu.memory_space<vmem>>, vector<1x8x256xf32>
    %151 = vector.shape_cast %150 : vector<1x8x256xf32> to vector<8x256xf32>
    %152 = vector.shape_cast %149 : vector<8x256xf32> to vector<1x8x256xf32>
    tpu.vector_store %arg6[%c0_42, %c0_43, %c0_44], %152 {strides = array<i32>} : memref<1x8x256xf32, #tpu.memory_space<vmem>>, vector<1x8x256xf32>,
    return
  }
  func.func @transform_0(%arg0: i32) -> (i32, i32, i32) {
    %c0_i32 = arith.constant 0 : i32
    %c0_i32_0 = arith.constant 0 : i32
    %c0_i32_1 = arith.constant 0 : i32
    return %arg0, %c0_i32, %c0_i32_0 : i32, i32, i32
  }
  func.func @transform_1(%arg0: i32) -> (i32, i32) {
    %c0_i32 = arith.constant 0 : i32
    %c0_i32_0 = arith.constant 0 : i32
    %c0_i32_1 = arith.constant 0 : i32
    return %c0_i32, %c0_i32_0 : i32, i32
  }
  func.func @transform_2(%arg0: i32) -> (i32, i32, i32) {
    %c0_i32 = arith.constant 0 : i32
    %c0_i32_0 = arith.constant 0 : i32
    %c0_i32_1 = arith.constant 0 : i32
    %c0_i32_2 = arith.constant 0 : i32
    return %c0_i32, %c0_i32_0, %c0_i32_1 : i32, i32, i32
  }
  func.func @transform_3(%arg0: i32) -> (i32, i32, i32) {
    %c0_i32 = arith.constant 0 : i32
    %c0_i32_0 = arith.constant 0 : i32
    %c0_i32_1 = arith.constant 0 : i32
    %c0_i32_2 = arith.constant 0 : i32
    return %c0_i32, %c0_i32_0, %c0_i32_1 : i32, i32, i32
  }
  func.func @transform_4(%arg0: i32) -> (i32, i32, i32) {
    %c0_i32 = arith.constant 0 : i32
    %c0_i32_0 = arith.constant 0 : i32
    %c0_i32_1 = arith.constant 0 : i32
    %c0_i32_2 = arith.constant 0 : i32
    return %c0_i32, %c0_i32_0, %c0_i32_1 : i32, i32, i32
  }
  func.func @transform_5(%arg0: i32) -> (i32, i32, i32) {
    %c0_i32 = arith.constant 0 : i32
    %c0_i32_0 = arith.constant 0 : i32
    %c0_i32_1 = arith.constant 0 : i32
    return %arg0, %c0_i32, %c0_i32_0 : i32, i32, i32
  }
}

</mosaic_0001>

<bundles_post_ra>
// kernel: tpu_custom_call.1
= control target key start
LH: loop header
LB: loop body
LE: loop exit
PB: predicated region body
PF: predicated region fallthrough
CT: control target
= control target key end

     0   :  { %10 = vsyncpa [#allocation3], 0  ;;  %s1552_s0 = inlined_call_operand.vmem [shape: f32[2,4,256], index: 0, kind: input, shape index: {}]   ;;  %s1553_s1 = inlined_call_operand.vmem [shape: f32[9,256], index: 1, kind: input, shape index: {}]   ;;  %s1554_s2 = inlined_call_operand.vmem [shape: f32[3,4,1], index: 2, kind: input, shape index: {}]   ;;  %s1555_s3 = inlined_call_operand.hbm [shape: f32[2,4,4], index: 3, kind: input, shape index: {}]   ;;  %s1556_s4 = inlined_call_operand.vmem [shape: bf16[9,8,4], index: 4, kind: input, shape index: {}]   ;;  %s1557_s5 = inlined_call_operand.hbm [shape: f32[2,8,256], index: 5, kind: output, shape index: {}]  }
   0x1   :  { %11 = vsyncpa [#allocation4], 0 }
   0x2   :  { %13 = vsyncpa [#allocation4 + $0x1], 0  ;;  %s1307_s18 = smov 0   ;;  %s1309_s19 = smov 0  }
   0x3   :  { %s1311_s20 = smov 0   ;;  %s1313_s21 = smov 0  }
   0x4 LB: > { %s1328_s22 = sadd.s32 4294967295, %s1261_s21   ;;  %s1039_s23 = sadd.s32 4294967294, %s1261_s21   ;;  %s1261_s21 = sphi %s1313_s21, %s1563_s21   ;;  %s1257_s20 = sphi %s1311_s20, %s1562_s20   ;;  %s1253_s19 = sphi %s1309_s19, %s1561_s19   ;;  %s1249_s18 = sphi %s1307_s18, %s1560_s18  }
   0x5   : > { %s1332_s24 = sadd.s32 1, %s1261_s21   ;;  %s136_s25 = sadd.s32 1, %s1257_s20 }
   0x6   : > { %s133_s26 = ssub.s32 %s1261_s21, %s1332_s24  ;;  %p146_p0 = scmp.ne.s32.totalorder %s1257_s20, %s1253_s19 }
   0x7   : > { %p134_p1 = scmp.eq.s32.totalorder %s133_s26, 0  ;;  %p147_p2 = scmp.eq.s32.totalorder %s1328_s22, 1 }
   0x8   : > { %p152_p3 = scmp.ne.s32.totalorder %s1253_s19, %s1249_s18  ;;  %p153_p4 = scmp.eq.s32.totalorder %s1039_s23, 1 }
   0x9   : > { %s1343_s27 = scalar_select %p134_p1, %s1257_s20, %s136_s25  }
   0xa   : > { %p1345_p5 = por %p147_p2, %p146_p0  ;;  %p1349_p6 = por %p153_p4, %p152_p3 }
   0xb   : > { %p1040_p7 = scmp.ge.s32.totalorder %s1261_s21, 1  ;;  %p160_p8 = scmp.lt.s32.totalorder %s1261_s21, 3 }
   0xc   : > { %p1098_p9 = scmp.eq.s32.totalorder %s1328_s22, 0  ;;  %s177_s7 = sshll.u32 %s1555_s3, 4  ;;  %s178_s7 = int_to_ptr.hbm [resolvable:$true] %s177_s7 }
   0xd   : > { %p161_p10 = pnand %p1040_p7, %p160_p8  ;;  %s1263_s8 = smov [#allocation2]  }
   0xe   : > { %s179_s9 = sshll.u32 %s1263_s8, 4  ;;  %s1264_s10 = smov 64   ;;  %s180_s9 = int_to_ptr.vmem [resolvable:$true] %s179_s9 }
   0xf   : > { %p1090_p11 = pneg %p161_p10  ;;  %s1265_s11 = smov 4  }
  0x10   : > { %206 = sbr.rel (%p161_p10) target bundleno = 1564 (0x61c), region = 40 }
  0x11   : > { %p1091_p12 = pnand %p1098_p9, %p1090_p11 }
  0x13   : > { %1093 = dma.hbm_to_vmem [thread:$0]  (!%p1091_p12), %s178_s7, 128, %s180_s9, [#allocation3], %s1264_s10, %s1264_s10, %s1265_s11  }
  0x15   : > { %1240 = dma.done.wait (%p1098_p9), [#allocation3], 128  }
  0x16   : > { %1242 = vsyncadd (%p1098_p9), [#allocation3], 4294967168  ;;  %v1266_v0 = vmov 0   ;;  %v242_v1 = vld [vmem:[%s1554_s2] sm:$0xf]  ;;  %p235_p13 = scmp.lt.s32.totalorder %s1328_s22, 1 }
  0x17   : > { %1147 = vset.pattern.permute.xlu0 %v1266_v0  ;;  %1148 = vset.pattern.permute.xlu1 %v1266_v0  ;;  %v1267_v2 = vmov 839922192   ;;  %vm263_vm0 = vcmask 1043456   ;;  %v309_v46 = vld [vmem:[#allocation2] sm:$0xf]  ;;  %vm310_vm1 = vcmask 31744  }
  0x18   : > { %249 = vperm.xlu0 %1147, %v242_v1   ;;  %s236_s14 = scalar_select %p235_p13, %s1328_s22, 1  ;;  %v1370_v3 = vunpack.c.l.s4 %v1267_v2  ;;  %vm337_vm2 = vcmask 3072   ;;  %v1268_v56 = vmov 4.0   ;;  %vm498_vm12 = vcmask 1041408  }
  0x19   : > { %s1269_s9 = smov 17   ;;  %s1270_s12 = smov 16  }
  0x1a   : > { %s1078_s15 = sshll.u32 %s236_s14, 3  ;;  %v253_v4 = vunpack.c.0.s8 %v1370_v3  ;;  %s1272_s16 = smov 1  }
  0x1b   : > { %s239_s23 = scalar_lea.vmem %s1552_s0, %s1078_s15  ;;  %s1271_s15 = smov 15  }
  0x1c   : > { %v1376_v6 = vld [vmem:[%s239_s23] sm:$0xff]  ;;  %s1273_s17 = smov 127   ;;  %s1274_s23 = smov 113  }
  0x1d   : > { %s232_s11 = sand.u32 1, %s1253_s19   ;;  %s1079_s13 = sshll.u32 %s1328_s22, 4 }
  0x1e   : > { %s952_s22 = scalar_lea.sflag [#allocation4], %s232_s11  ;;  %s1215_s8 = scalar_lea.hbm %s1557_s5, 32 }
  0x8a   : > { %v250_v5 = vpop.permute.xlu0 %249 }
  0x8b   : > { %v254_v7 = vperm.slane %v250_v5, %v253_v4 }
  0x8d   : > { %v256_v8 = vmul.f32 %v254_v7, %v1376_v6 }
  0x8f   : > { %258 = vst [vmem:[#allocation1] ss:$2 sm:$0xff] %v256_v8 }
  0x96   : > { %v259_v9 = vld.sshfl [vmem:[#allocation1] sm:$0xff pattern:$0x75316420]  ;;  %v260_v10 = vld.sshfl [vmem:[#allocation1 + $0x8] sm:$0xff pattern:$0x75316420] }
  0x97   : > { %v264_v11 = vsel %vm263_vm0, %v259_v9, 0.0  ;;  %v271_v12 = vsel %vm263_vm0, %v260_v10, 0.0 }
  0x98   : > { %v265_v13 = vrot.slane %v264_v11, 4  ;;  %v272_v14 = vrot.slane %v271_v12, 4 }
  0x9a   : > { %v266_v15 = vadd.f32 %v265_v13, %v264_v11  ;;  %v273_v16 = vadd.f32 %v272_v14, %v271_v12 }
  0x9c   : > { %v267_v17 = vrot.slane %v266_v15, 2  ;;  %v274_v18 = vrot.slane %v273_v16, 2 }
  0x9e   : > { %v268_v19 = vadd.f32 %v267_v17, %v266_v15  ;;  %v275_v20 = vadd.f32 %v274_v18, %v273_v16 }
  0xa0   : > { %v269_v21 = vrot.slane %v268_v19, 1  ;;  %v276_v22 = vrot.slane %v275_v20, 1 }
  0xa2   : > { %v270_v23 = vadd.f32 %v269_v21, %v268_v19  ;;  %v277_v24 = vadd.f32 %v276_v22, %v275_v20 }
  0xa4   : > { %v278_v25 = vmax.f32 %v270_v23, %v277_v24 }
  0xa6   : > { %279 = vmax.xlane.f32.xlu0 %v278_v25 }
 0x119   : > { %v280_v26 = vpop.xlane.xlu0 %279 }
 0x11a   : > { %v281_v27 = vsub.f32 %v270_v23, %v280_v26  ;;  %v282_v28 = vsub.f32 %v277_v24, %v280_v26  ;;  %v1048_v23 = vld [vmem:[%s1554_s2 + $0x4] sm:$0xf]  ;;  %v1049_v26 = vld [vmem:[%s1554_s2 + $0x8] sm:$0xf] }
 0x11c   : > { %v283_v29 = vmul.f32 1.442695, %v281_v27  ;;  %v285_v30 = vmul.f32 1.442695, %v282_v28 }
 0x11e   : > { %1151 = vpow2.f32 %v283_v29 }
 0x11f   : > { %1153 = vpow2.f32 %v285_v30  ;;  %v387_v30 = vld [vmem:[#allocation2 + $0x4] sm:$0xf] }
 0x124   : > { %v1152_v31 = vpop.eup %1151 }
 0x125   : > { %v1154_v32 = vpop.eup %1153 }
 0x126   : > { %v289_v33 = vrot.slane %v1154_v32, 4  ;;  %v304_v34 = vadd.f32 %v1154_v32, %v1152_v31 }
 0x128   : > { %v290_v35 = vsel %vm263_vm0, %v1152_v31, %v289_v33  ;;  %305 = vadd.xlane.f32.xlu1 %v304_v34 }
 0x129   : > { %v292_v36 = vmul.f32 %v290_v35, %v1376_v6 }
 0x12b   : > { %294 = vst [vmem:[#allocation1] ss:$2 sm:$0xff] %v292_v36 }
 0x132   : > { %v295_v37 = vld.sshfl [vmem:[#allocation1] sm:$0xff pattern:$0x75316420]  ;;  %v296_v38 = vld.sshfl [vmem:[#allocation1 + $0x8] sm:$0xff pattern:$0x75316420] }
 0x133   : > { %v299_v39 = vsel %vm263_vm0, %v295_v37, 0.0  ;;  %v300_v40 = vsel %vm263_vm0, %v296_v38, 0.0 }
 0x134   : > { %v301_v41 = vadd.f32 %v300_v40, %v299_v39 }
 0x136   : > { %302 = vadd.xlane.f32.xlu1 %v301_v41 }
 0x19b   : > { %v306_v42 = vpop.xlane.xlu1 %305 }
 0x19c   : > { %1155 = vrcp.f32 %v306_v42 }
 0x19d   : > { %1157 = vrcp.f32 %v1268_v56 }
 0x1a2   : > { %v1156_v43 = vpop.eup %1155 }
 0x1a3   : > { %v1158_v57 = vpop.eup %1157 }
 0x1a4   : > { %v350_v58 = vmul.f32 4.0, %v1158_v57  ;;  %vm354_vm3 = vweird.f32 %v1158_v57 }
 0x1a6   : > { %v351_v59 = vsub.f32 1.0, %v350_v58 }
 0x1a8   : > { %v352_v60 = vmul.f32 %v1158_v57, %v351_v59 }
 0x1a9   : > { %v303_v44 = vpop.xlane.xlu1 %302 }
 0x1aa   : > { %v308_v45 = vmul.f32 %v1156_v43, %v303_v44  ;;  %v353_v61 = vadd.f32 %v1158_v57, %v352_v60 }
 0x1ac   : > { %1050 = vmatpush.msk.msra.mxu0 %vm263_vm0, %v308_v45  ;;  %v355_v62 = vsel %vm354_vm3, %v1158_v57, %v353_v61 }
 0x1ad   : > { %1051 = vmatmul.msk.f32.vlgmr.msra.gmra.mxu0 %vm310_vm1, %v309_v46 }
 0x22a   : > { %v334_v47 = vpop.f32.mrf.mxu0 }
 0x22b   : > { %v338_v48 = vsel %vm337_vm2, %v334_v47, 0.0 }
 0x22c   : > { %339 = vadd.xlane.f32.xlu2 %v338_v48 }
 0x29f   : > { %v340_v49 = vpop.xlane.xlu2 %339 }
 0x2a0   : > { %v341_v50 = vrot.slane %v340_v49, 4 }
 0x2a2   : > { %v342_v51 = vadd.f32 %v341_v50, %v340_v49  ;;  %v1405_v50 = vld [vmem:[%s1553_s1 + $0x8] sm:$0xff] }
 0x2a3   : > { %v677_v3 = vperm.slane %v1405_v50, 4 }
 0x2a4   : > { %v343_v52 = vrot.slane %v342_v51, 2 }
 0x2a6   : > { %v344_v53 = vadd.f32 %v343_v52, %v342_v51 }
 0x2a8   : > { %v345_v54 = vrot.slane %v344_v53, 1 }
 0x2aa   : > { %v346_v55 = vadd.f32 %v345_v54, %v344_v53  ;;  %v680_v53 = vrot.slane %v677_v3, 4 }
 0x2ac   : > { %1080 = vpush %v346_v55 }
 0x2dd   : > { %s1081_s25 = spop %1080 }
 0x2de   : > { %v348_v63 = vstv %s1081_s25  ;;  %s1275_s25 = smov 112  }
 0x2df   : > { %v356_v0 = vmul.f32 %v355_v62, %v348_v63 }
 0x2e1   : > { %v357_v1 = vsub.f32 %v334_v47, %v356_v0 }
 0x2e3   : > { %v358_v2 = vmul.f32 %v357_v1, %v357_v1 }
 0x2e5   : > { %v359_v5 = vsel %vm337_vm2, %v358_v2, 0.0 }
 0x2e6   : > { %360 = vadd.xlane.f32.xlu2 %v359_v5 }
 0x359   : > { %v361_v7 = vpop.xlane.xlu2 %360 }
 0x35a   : > { %v362_v8 = vrot.slane %v361_v7, 4 }
 0x35c   : > { %v363_v9 = vadd.f32 %v362_v8, %v361_v7 }
 0x35e   : > { %v364_v10 = vrot.slane %v363_v9, 2 }
 0x360   : > { %v365_v11 = vadd.f32 %v364_v10, %v363_v9  ;;  %v466_v9 = vlaneseq }
 0x362   : > { %v366_v12 = vrot.slane %v365_v11, 1 }
 0x364   : > { %v367_v13 = vadd.f32 %v366_v12, %v365_v11  ;;  %v1419_v11 = vand.u32 127, %v466_v9 }
 0x366   : > { %1082 = vpush %v367_v13  ;;  %vm486_vm11 = vcmp.lt.s32.totalorder %v1419_v11, 16  ;;  %v490_v13 = vperm.slane %v1405_v50, 1  ;;  %vm575_vm13 = vcmp.lt.s32.totalorder %v1419_v11, 15  ;;  %vm468_vm14 = vcmp.lt.s32.totalorder %v1419_v11, 17 }
 0x367   : > { %vm630_vm15 = vcmp.lt.s32.totalorder %v1419_v11, 1  ;;  %vm793_vm2 = vcmp.lt.s32.totalorder %v1419_v11, 113  ;;  %vm903_vm3 = vcmp.lt.s32.totalorder %v1419_v11, 111 }
 0x397   : > { %s1083_s26 = spop %1082 }
 0x398   : > { %v369_v14 = vstv %s1083_s26  ;;  %s1276_s26 = smov 111  }
 0x399   : > { %v370_v15 = vmul.f32 %v369_v14, %v355_v62 }
 0x39b   : > { %v371_v16 = vadd.f32 1e-05, %v370_v15 }
 0x39d   : > { %1159 = vrsqrt.f32 %v371_v16  ;;  %vm378_vm5 = vweird.f32 %v371_v16 }
 0x3a3   : > { %v1160_v17 = vpop.eup %1159 }
 0x3a4   : > { %v373_v18 = vmul.f32 %v1160_v17, %v371_v16  ;;  %vm379_vm4 = vweird.f32 %v1160_v17 }
 0x3a5   : > { %vm380_vm6 = vmor %vm378_vm5, %vm379_vm4  ;;  %vm848_vm4 = vcmp.lt.s32.totalorder %v1419_v11, 112 }
 0x3a6   : > { %v374_v19 = vmul.f32 %v1160_v17, %v373_v18 }
 0x3a8   : > { %v375_v20 = vmul.f32 0.5, %v374_v19 }
 0x3aa   : > { %v376_v21 = vsub.f32 1.5, %v375_v20 }
 0x3ac   : > { %v377_v22 = vmul.f32 %v1160_v17, %v376_v21 }
 0x3ae   : > { %v381_v24 = vsel %vm380_vm6, %v1160_v17, %v377_v22 }
 0x3af   : > { %v382_v25 = vmul.f32 %v381_v24, %v357_v1 }
 0x3b1   : > { %v383_v27 = vmul.f32 %v1048_v23, %v382_v25  ;;  %v448_v23 = vld [vmem:[%s1556_s4 + $0x4] sm:$0xf] }
 0x3b3   : > { %v384_v28 = vadd.f32 %v1049_v26, %v383_v27  ;;  %v579_v26 = vperm.slane %v1405_v50, 2 }
 0x3b5   : > { %v385_v29 = vmax.f32 %v384_v28, 0.0 }
 0x3b7   : > { %1052 = vmatpush.msk.msra.mxu1 %vm263_vm0, %v385_v29 }
 0x3b8   : > { %1053 = vmatmul.msk.f32.vlgmr.msra.gmra.mxu1 %vm310_vm1, %v387_v30 }
 0x435   : > { %v411_v31 = vpop.f32.mrf.mxu1 }
 0x436   : > { %v1054_v32 = vmul.f32 -1.442695, %v411_v31 }
 0x438   : > { %1161 = vpow2.f32 %v1054_v32 }
 0x43e   : > { %v1162_v33 = vpop.eup %1161 }
 0x43f   : > { %v417_v34 = vadd.f32 1.0, %v1162_v33 }
 0x441   : > { %1163 = vrcp.f32 %v417_v34  ;;  %v429_v38 = vand.u32 2147483648, %v417_v34  ;;  %v427_v40 = vand.u32 2147483647, %v417_v34  ;;  %vm423_vm8 = vweird.f32 %v417_v34 }
 0x443   : > { %v430_v42 = vor.u32 1.1754944e-38, %v429_v38  ;;  %vm428_vm10 = vcmp.eq.f32.partialorder %v427_v40, 8.507059e+37  ;;  %v472_v40 = vperm.slane %v1405_v50, 0 }
 0x447   : > { %v1164_v35 = vpop.eup %1163 }
 0x448   : > { %v419_v36 = vmul.f32 %v1164_v35, %v417_v34  ;;  %vm424_vm7 = vweird.f32 %v1164_v35 }
 0x449   : > { %vm425_vm9 = vmor %vm423_vm8, %vm424_vm7 }
 0x44a   : > { %v420_v37 = vsub.f32 1.0, %v419_v36 }
 0x44c   : > { %v421_v39 = vmul.f32 %v1164_v35, %v420_v37 }
 0x44e   : > { %v422_v41 = vadd.f32 %v1164_v35, %v421_v39 }
 0x450   : > { %v426_v43 = vsel %vm425_vm9, %v1164_v35, %v422_v41 }
 0x451   : > { %v431_v44 = vsel %vm428_vm10, %v430_v42, %v426_v43  ;;  %v449_v43 = vld [vmem:[%s1556_s4 + $0x8] sm:$0xf] }
 0x452   : > { %435 = vperm.xlu1 %1148, %v431_v44  }
 0x4c4   : > { %v436_v45 = vpop.permute.xlu1 %435 }
 0x4c5   : > { %v440_v46 = vperm.slane %v436_v45, %v253_v4  ;;  %v1411_v4 = vld [vmem:[%s1553_s1] sm:$0xff] }
 0x4c6   : > { %v489_v12 = vperm.slane %v1411_v4, 1  ;;  %v578_v25 = vperm.slane %v1411_v4, 2  ;;  %v471_v39 = vperm.slane %v1411_v4, 0 }
 0x4c7   : > { %v442_v47 = vmul.f32 %v440_v46, %v1376_v6  ;;  %v676_v6 = vperm.slane %v1411_v4, 4 }
 0x4c9   : > { %457 = vst [vmem:[#allocation1] ss:$2 sm:$0xff] %v442_v47  ;;  %v681_v56 = vsel %vm263_vm0, %v676_v6, %v680_v53  ;;  %vm738_vm0 = vcmp.lt.s32.totalorder %v1419_v11, 127 }
 0x4ca   : > { %v683_v57 = vmul.f32 %v681_v56, %v442_v47  ;;  %v447_v56 = vld [vmem:[%s1556_s4] sm:$0xf] }
 0x4d0   : > { %v459_v48 = vld.sshfl [vmem:[#allocation1 + $0x8] sm:$0xff pattern:$0x75316420]  ;;  %v458_v49 = vld.sshfl [vmem:[#allocation1] sm:$0xff pattern:$0x75316420] }
 0x4d1   : > { %464 = vrot.lane.b32.xlu0 %v459_v48, %s1269_s9  ;;  %477 = vst [vmem:[#allocation1] ss:$2 sm:$0xff] %v442_v47 }
 0x4d8   : > { %v478_v51 = vld.sshfl [vmem:[#allocation1] sm:$0xff pattern:$0x75316420]  ;;  %v479_v52 = vld.sshfl [vmem:[#allocation1 + $0x8] sm:$0xff pattern:$0x75316420] }
 0x4d9   : > { %482 = vrot.lane.b32.xlu2 %v478_v51, %s1270_s12  ;;  %566 = vst [vmem:[#allocation1] ss:$2 sm:$0xff] %v442_v47 }
 0x4e0   : > { %v567_v54 = vld.sshfl [vmem:[#allocation1] sm:$0xff pattern:$0x75316420]  ;;  %v568_v55 = vld.sshfl [vmem:[#allocation1 + $0x8] sm:$0xff pattern:$0x75316420] }
 0x4e1   : > { %484 = vrot.lane.b32.xlu2 %v479_v52, %s1270_s12  ;;  %571 = vrot.lane.b32.xlu1 %v567_v54, %s1271_s15  ;;  %621 = vst [vmem:[#allocation1] ss:$2 sm:$0xff] %v442_v47  ;;  %v633_v54 = vperm.slane %v1411_v4, 3  ;;  %s1045_s12 = sshll.u32 %s232_s11, 4 }
 0x4e8   : > { %v623_v58 = vld.sshfl [vmem:[#allocation1 + $0x8] sm:$0xff pattern:$0x75316420]  ;;  %v622_v59 = vld.sshfl [vmem:[#allocation1] sm:$0xff pattern:$0x75316420] }
 0x4e9   : > { %573 = vrot.lane.b32.xlu2 %v568_v55, %s1271_s15  ;;  %462 = vrot.lane.b32.xlu1 %v458_v49, %s1269_s9  ;;  %685 = vst [vmem:[#allocation1] ss:$2 sm:$0xff] %v683_v57  ;;  %v634_v55 = vperm.slane %v1405_v50, 3 }
 0x4f0   : > { %v1415_v60 = vld.sshfl [vmem:[#allocation1] sm:$0xff pattern:$0x75316420]  ;;  %v1417_v61 = vld.sshfl [vmem:[#allocation1 + $0x8] sm:$0xff pattern:$0x75316420] }
 0x4f1   : > { %628 = vrot.lane.b32.xlu1 %v623_v58, %s1272_s16  ;;  %626 = vrot.lane.b32.xlu2 %v622_v59, %s1272_s16  ;;  %729 = vst [vmem:[#allocation1] ss:$2 sm:$0xff] %v442_v47  ;;  %v691_v32 = vpack.c.bf16 %v1417_v61, %v1417_v61  ;;  %v690_v33 = vpack.c.bf16 %v1415_v60, %v1415_v60  ;;  %s963_s16 = scalar_lea.hbm %s1557_s5, %s1079_s13 }
 0x4f3   : > { %v699_v41 = vsel %vm498_vm12, %v691_v32, 0  ;;  %v696_v42 = vsel %vm498_vm12, %v690_v33, 0  ;;  %v1149_v32 = vld [vmem:[%s1553_s1 + $0x10] ss:$0 sm:$0xff]  ;;  %v1150_v33 = vld [vmem:[%s1553_s1 + $0x18] ss:$0 sm:$0xff] }
 0x4f8   : > { %v731_v62 = vld.sshfl [vmem:[#allocation1 + $0x8] sm:$0xff pattern:$0x75316420]  ;;  %v730_v63 = vld.sshfl [vmem:[#allocation1] sm:$0xff pattern:$0x75316420] }
 0x4f9   : > { %734 = vrot.lane.b32.xlu0 %v730_v63, %s1273_s17  ;;  %784 = vst [vmem:[#allocation1] ss:$2 sm:$0xff] %v442_v47 }
 0x500   : > { %v786_v0 = vld.sshfl [vmem:[#allocation1 + $0x8] sm:$0xff pattern:$0x75316420]  ;;  %v785_v1 = vld.sshfl [vmem:[#allocation1] sm:$0xff pattern:$0x75316420] }
 0x501   : > { %791 = vrot.lane.b32.xlu1 %v786_v0, %s1274_s23  ;;  %789 = vrot.lane.b32.xlu2 %v785_v1, %s1274_s23  ;;  %839 = vst [vmem:[#allocation1] ss:$2 sm:$0xff] %v442_v47 }
 0x508   : > { %v841_v2 = vld.sshfl [vmem:[#allocation1 + $0x8] sm:$0xff pattern:$0x75316420]  ;;  %v840_v5 = vld.sshfl [vmem:[#allocation1] sm:$0xff pattern:$0x75316420] }
 0x509   : > { %736 = vrot.lane.b32.xlu2 %v731_v62, %s1273_s17  ;;  %894 = vst [vmem:[#allocation1] ss:$2 sm:$0xff] %v442_v47  ;;  %s234_s17 = scalar_lea.vmem [#allocation5], %s1045_s12 }
 0x50a   : > { %s965_s23 = sshll.u32 %s234_s17, 4  ;;  %s966_s23 = int_to_ptr.vmem [resolvable:$true] %s965_s23 }
 0x510   : > { %v896_v7 = vld.sshfl [vmem:[#allocation1 + $0x8] sm:$0xff pattern:$0x75316420]  ;;  %v895_v8 = vld.sshfl [vmem:[#allocation1] sm:$0xff pattern:$0x75316420] }
 0x511   : > { %844 = vrot.lane.b32.xlu2 %v840_v5, %s1275_s25  ;;  %901 = vrot.lane.b32.xlu0 %v896_v7, %s1276_s26  ;;  %v742_v5 = vperm.slane %v1405_v50, 5  ;;  %v451_v7 = vld [vmem:[%s1556_s4 + $0x10] sm:$0xf] }
 0x512   : > { %899 = vrot.lane.b32.xlu1 %v895_v8, %s1276_s26 }
 0x51a   : > { %846 = vrot.lane.b32.xlu1 %v841_v2, %s1275_s25  ;;  %v741_v2 = vperm.slane %v1411_v4, 5  ;;  %s967_s25 = sshll.u32 %s963_s16, 4  ;;  %s968_s25 = int_to_ptr.hbm [resolvable:$true] %s967_s25 }
 0x51b   : > { %s1209_s26 = sshra.s32 %s968_s25, 4  ;;  %s1210_s26 = int_to_ptr.hbm [resolvable:$true] %s1209_s26 }
 0x51c   : > { %s1211_s30 = scalar_lea.hbm %s1210_s26, 16  ;;  %p1216_p3 = scmp.lt.s32.totalorder %s1210_s26, %s1557_s5 }
 0x51d   : > { %p1212_p0 = scmp.ne.s32.totalorder %s1210_s26, %s1211_s30  ;;  %p1217_p4 = scmp.lt.s32.totalorder %s1215_s8, %s1211_s30 }
 0x51f   : > { %p1213_p1 = pnand %p1212_p0, %p1345_p5  ;;  %p1218_p7 = por %p1217_p4, %p1216_p3 }
 0x521   : > { %p1214_p2 = pneg %p1213_p1 }
 0x523   : > { %p1219_p8 = pnand %p1218_p7, %p1214_p2 }
 0x533   : > { %v483_v10 = vpop.permute.xlu2 %482 }
 0x53b   : > { %v485_v14 = vpop.permute.xlu2 %484 }
 0x53c   : > { %v487_v15 = vsel %vm486_vm11, %v483_v10, %v485_v14  ;;  %v488_v16 = vsel %vm486_vm11, %v485_v14, %v483_v10 }
 0x53d   : > { %v491_v17 = vmul.f32 %v489_v12, %v488_v16  ;;  %v492_v18 = vmul.f32 %v490_v13, %v487_v15 }
 0x53f   : > { %v493_v19 = vpack.c.bf16 %v491_v17, %v491_v17  ;;  %v494_v20 = vpack.c.bf16 %v492_v18, %v492_v18 }
 0x541   : > { %v500_v21 = vsel %vm498_vm12, %v493_v19, 0  ;;  %v503_v22 = vsel %vm498_vm12, %v494_v20, 0  ;;  %v796_v19 = vperm.slane %v1411_v4, 6  ;;  %v797_v20 = vperm.slane %v1405_v50, 6 }
 0x542   : > { %512 = vmatpush.bf16.msra.mxu2 %v500_v21  ;;  %525 = vmatpush.bf16.msra.mxu3 %v503_v22  ;;  %v450_v21 = vld [vmem:[%s1556_s4 + $0xc] sm:$0xf] }
 0x543   : > { %v574_v24 = vpop.permute.xlu2 %573  ;;  %v465_v44 = vpop.permute.xlu0 %464 }
 0x545   : > { %1055 = vmatmul.msk.bf16.vlgmr.msra.gmra.mxu2 %vm310_vm1, %v448_v23  ;;  %1056 = vmatmul.msk.bf16.vlgmr.msra.gmra.mxu3 %vm310_vm1, %v448_v23 }
 0x54b   : > { %v627_v36 = vpop.permute.xlu2 %626 }
 0x553   : > { %v572_v27 = vpop.permute.xlu1 %571 }
 0x554   : > { %v576_v28 = vsel %vm575_vm13, %v572_v27, %v574_v24  ;;  %v577_v29 = vsel %vm575_vm13, %v574_v24, %v572_v27 }
 0x555   : > { %v580_v30 = vmul.f32 %v578_v25, %v577_v29  ;;  %v581_v31 = vmul.f32 %v579_v26, %v576_v28 }
 0x557   : > { %v582_v34 = vpack.c.bf16 %v580_v30, %v580_v30  ;;  %v583_v35 = vpack.c.bf16 %v581_v31, %v581_v31  ;;  %v453_v31 = vld [vmem:[%s1556_s4 + $0x18] sm:$0xf] }
 0x559   : > { %v588_v37 = vsel %vm498_vm12, %v582_v34, 0  ;;  %v591_v38 = vsel %vm498_vm12, %v583_v35, 0  ;;  %v452_v34 = vld [vmem:[%s1556_s4 + $0x14] sm:$0xf] }
 0x55a   : > { %600 = vmatpush.bf16.msrb.mxu2 %v588_v37  ;;  %613 = vmatpush.bf16.msrb.mxu3 %v591_v38 }
 0x55b   : > { %v463_v45 = vpop.permute.xlu1 %462  ;;  %v790_v3 = vpop.permute.xlu2 %789 }
 0x55c   : > { %v469_v46 = vsel %vm468_vm14, %v463_v45, %v465_v44  ;;  %v470_v47 = vsel %vm468_vm14, %v465_v44, %v463_v45  ;;  %v851_v45 = vperm.slane %v1411_v4, 7 }
 0x55d   : > { %v473_v48 = vmul.f32 %v471_v39, %v470_v47  ;;  %v474_v49 = vmul.f32 %v472_v40, %v469_v46  ;;  %1059 = vmatmul.msk.bf16.vlgmr.msrb.gmra.mxu2 %vm310_vm1, %v449_v43  ;;  %1060 = vmatmul.msk.bf16.vlgmr.msrb.gmra.mxu3 %vm310_vm1, %v449_v43  ;;  %v852_v46 = vperm.slane %v1405_v50, 7  ;;  %v455_v47 = vld [vmem:[%s1556_s4 + $0x20] sm:$0xf] }
 0x55e   : > { %721 = vmatpush.bf16.msra.mxu3 %v699_v41  ;;  %708 = vmatpush.bf16.msra.mxu2 %v696_v42 }
 0x55f   : > { %v475_v51 = vpack.c.bf16 %v473_v48, %v473_v48  ;;  %v476_v52 = vpack.c.bf16 %v474_v49, %v474_v49 }
 0x561   : > { %v535_v6 = vsel %vm498_vm12, %v475_v51, 0  ;;  %v538_v53 = vsel %vm498_vm12, %v476_v52, 0 }
 0x562   : > { %547 = vmatpush.bf16.msrb.mxu0 %v535_v6  ;;  %560 = vmatpush.bf16.msrb.mxu1 %v538_v53 }
 0x563   : > { %v629_v57 = vpop.permute.xlu1 %628  ;;  %v737_v8 = vpop.permute.xlu2 %736 }
 0x564   : > { %v631_v58 = vsel %vm630_vm15, %v627_v36, %v629_v57  ;;  %v632_v59 = vsel %vm630_vm15, %v629_v57, %v627_v36 }
 0x565   : > { %v635_v60 = vmul.f32 %v633_v54, %v632_v59  ;;  %v636_v61 = vmul.f32 %v634_v55, %v631_v58  ;;  %1057 = vmatmul.msk.bf16.vlgmr.msrb.gmra.mxu0 %vm310_vm1, %v447_v56  ;;  %1058 = vmatmul.msk.bf16.vlgmr.msrb.gmra.mxu1 %vm310_vm1, %v447_v56  ;;  %v454_v54 = vld [vmem:[%s1556_s4 + $0x1c] sm:$0xf] }
 0x567   : > { %v637_v62 = vpack.c.bf16 %v635_v60, %v635_v60  ;;  %v638_v63 = vpack.c.bf16 %v636_v61, %v636_v61 }
 0x569   : > { %v643_v0 = vsel %vm498_vm12, %v637_v62, 0  ;;  %v646_v1 = vsel %vm498_vm12, %v638_v63, 0 }
 0x56a   : > { %655 = vmatpush.bf16.msra.mxu0 %v643_v0  ;;  %668 = vmatpush.bf16.msra.mxu1 %v646_v1 }
 0x56b   : > { %v735_v9 = vpop.permute.xlu0 %734  ;;  %v845_v48 = vpop.permute.xlu2 %844 }
 0x56c   : > { %v739_v10 = vsel %vm738_vm0, %v735_v9, %v737_v8  ;;  %v740_v12 = vsel %vm738_vm0, %v737_v8, %v735_v9 }
 0x56d   : > { %v743_v13 = vmul.f32 %v741_v2, %v739_v10  ;;  %v744_v14 = vmul.f32 %v742_v5, %v740_v12  ;;  %1063 = vmatmul.msk.bf16.vlgmr.msra.gmra.mxu2 %vm310_vm1, %v451_v7  ;;  %1064 = vmatmul.msk.bf16.vlgmr.msra.gmra.mxu3 %vm310_vm1, %v451_v7 }
 0x56f   : > { %v745_v15 = vpack.c.bf16 %v743_v13, %v743_v13  ;;  %v746_v16 = vpack.c.bf16 %v744_v14, %v744_v14 }
 0x571   : > { %v751_v17 = vsel %vm498_vm12, %v745_v15, 0  ;;  %v754_v18 = vsel %vm498_vm12, %v746_v16, 0 }
 0x572   : > { %763 = vmatpush.bf16.msrb.mxu0 %v751_v17  ;;  %776 = vmatpush.bf16.msrb.mxu1 %v754_v18 }
 0x573   : > { %v792_v22 = vpop.permute.xlu1 %791 }
 0x574   : > { %v794_v23 = vsel %vm793_vm2, %v790_v3, %v792_v22  ;;  %v795_v24 = vsel %vm793_vm2, %v792_v22, %v790_v3 }
 0x575   : > { %v798_v25 = vmul.f32 %v796_v19, %v794_v23  ;;  %v799_v26 = vmul.f32 %v797_v20, %v795_v24  ;;  %1061 = vmatmul.msk.bf16.vlgmr.msra.gmra.mxu0 %vm310_vm1, %v450_v21  ;;  %1062 = vmatmul.msk.bf16.vlgmr.msra.gmra.mxu1 %vm310_vm1, %v450_v21 }
 0x577   : > { %v800_v27 = vpack.c.bf16 %v798_v25, %v798_v25  ;;  %v801_v28 = vpack.c.bf16 %v799_v26, %v799_v26 }
 0x579   : > { %v806_v29 = vsel %vm498_vm12, %v800_v27, 0  ;;  %v809_v30 = vsel %vm498_vm12, %v801_v28, 0 }
 0x57a   : > { %818 = vmatpush.bf16.msrb.mxu2 %v806_v29  ;;  %831 = vmatpush.bf16.msrb.mxu3 %v809_v30 }
 0x57d   : > { %1067 = vmatmul.msk.bf16.vlgmr.msrb.gmra.mxu2 %vm310_vm1, %v453_v31  ;;  %1068 = vmatmul.msk.bf16.vlgmr.msrb.gmra.mxu3 %vm310_vm1, %v453_v31 }
 0x583   : > { %v902_v35 = vpop.permute.xlu0 %901 }
 0x584   : > { %v900_v36 = vpop.permute.xlu1 %899 }
 0x585   : > { %v904_v37 = vsel %vm903_vm3, %v900_v36, %v902_v35  ;;  %v905_v38 = vsel %vm903_vm3, %v902_v35, %v900_v36  ;;  %1065 = vmatmul.msk.bf16.vlgmr.msrb.gmra.mxu0 %vm310_vm1, %v452_v34  ;;  %1066 = vmatmul.msk.bf16.vlgmr.msrb.gmra.mxu1 %vm310_vm1, %v452_v34 }
 0x586   : > { %v908_v39 = vmul.f32 %v1149_v32, %v904_v37  ;;  %v909_v40 = vmul.f32 %v1150_v33, %v905_v38 }
 0x588   : > { %v910_v41 = vpack.c.bf16 %v908_v39, %v908_v39  ;;  %v911_v42 = vpack.c.bf16 %v909_v40, %v909_v40 }
 0x58a   : > { %v916_v43 = vsel %vm498_vm12, %v910_v41, 0  ;;  %v919_v44 = vsel %vm498_vm12, %v911_v42, 0 }
 0x58b   : > { %928 = vmatpush.bf16.msra.mxu2 %v916_v43  ;;  %941 = vmatpush.bf16.msra.mxu3 %v919_v44 }
 0x58c   : > { %v847_v49 = vpop.permute.xlu1 %846 }
 0x58d   : > { %v849_v51 = vsel %vm848_vm4, %v845_v48, %v847_v49  ;;  %v850_v52 = vsel %vm848_vm4, %v847_v49, %v845_v48 }
 0x58e   : > { %v853_v3 = vmul.f32 %v851_v45, %v849_v51  ;;  %v854_v11 = vmul.f32 %v852_v46, %v850_v52  ;;  %1071 = vmatmul.msk.bf16.vlgmr.msra.gmra.mxu2 %vm310_vm1, %v455_v47  ;;  %1072 = vmatmul.msk.bf16.vlgmr.msra.gmra.mxu3 %vm310_vm1, %v455_v47 }
 0x590   : > { %v855_v6 = vpack.c.bf16 %v853_v3, %v853_v3  ;;  %v856_v4 = vpack.c.bf16 %v854_v11, %v854_v11 }
 0x592   : > { %v861_v50 = vsel %vm498_vm12, %v855_v6, 0  ;;  %v864_v53 = vsel %vm498_vm12, %v856_v4, 0 }
 0x593   : > { %873 = vmatpush.bf16.msra.mxu0 %v861_v50  ;;  %886 = vmatpush.bf16.msra.mxu1 %v864_v53 }
 0x596   : > { %1069 = vmatmul.msk.bf16.vlgmr.msra.gmra.mxu0 %vm310_vm1, %v454_v54  ;;  %1070 = vmatmul.msk.bf16.vlgmr.msra.gmra.mxu1 %vm310_vm1, %v454_v54 }
 0x5c8   : > { %v514_v55 = vpop.f32.mrf.mxu2  ;;  %v527_v56 = vpop.f32.mrf.mxu3 }
 0x5d0   : > { %v516_v57 = vpop.f32.mrf.mxu2  ;;  %v529_v58 = vpop.f32.mrf.mxu3 }
 0x5e0   : > { %v602_v59 = vpop.f32.mrf.mxu2  ;;  %v615_v60 = vpop.f32.mrf.mxu3 }
 0x5e2   : > { %v549_v61 = vpop.f32.mrf.mxu0  ;;  %v562_v62 = vpop.f32.mrf.mxu1 }
 0x5e3   : > { %v550_v17 = vadd.f32 %v549_v61, %v514_v55  ;;  %v563_v18 = vadd.f32 %v562_v62, %v527_v56 }
 0x5e5   : > { %v619_v21 = vadd.f32 %v602_v59, %v550_v17  ;;  %v620_v22 = vadd.f32 %v615_v60, %v563_v18 }
 0x5e8   : > { %v604_v63 = vpop.f32.mrf.mxu2  ;;  %v617_v0 = vpop.f32.mrf.mxu3 }
 0x5ea   : > { %v551_v1 = vpop.f32.mrf.mxu0  ;;  %v564_v2 = vpop.f32.mrf.mxu1 }
 0x5f0   : > { %v710_v5 = vpop.f32.mrf.mxu2  ;;  %v723_v7 = vpop.f32.mrf.mxu3 }
 0x5f2   : > { %v657_v8 = vpop.f32.mrf.mxu0  ;;  %v670_v9 = vpop.f32.mrf.mxu1 }
 0x5f3   : > { %v674_v23 = vadd.f32 %v657_v8, %v619_v21  ;;  %v675_v24 = vadd.f32 %v670_v9, %v620_v22 }
 0x5f5   : > { %v727_v29 = vadd.f32 %v710_v5, %v674_v23  ;;  %v728_v30 = vadd.f32 %v723_v7, %v675_v24 }
 0x5f8   : > { %v712_v10 = vpop.f32.mrf.mxu2  ;;  %v725_v12 = vpop.f32.mrf.mxu3 }
 0x5fa   : > { %v659_v13 = vpop.f32.mrf.mxu0  ;;  %v672_v14 = vpop.f32.mrf.mxu1 }
 0x600   : > { %v820_v15 = vpop.f32.mrf.mxu2  ;;  %v833_v16 = vpop.f32.mrf.mxu3 }
 0x602   : > { %v765_v19 = vpop.f32.mrf.mxu0  ;;  %v778_v20 = vpop.f32.mrf.mxu1 }
 0x603   : > { %v782_v31 = vadd.f32 %v765_v19, %v727_v29  ;;  %v783_v32 = vadd.f32 %v778_v20, %v728_v30 }
 0x605   : > { %v837_v35 = vadd.f32 %v820_v15, %v782_v31  ;;  %v838_v36 = vadd.f32 %v833_v16, %v783_v32 }
 0x608   : > { %v822_v25 = vpop.f32.mrf.mxu2  ;;  %v835_v26 = vpop.f32.mrf.mxu3 }
 0x60a   : > { %v767_v27 = vpop.f32.mrf.mxu0  ;;  %v780_v28 = vpop.f32.mrf.mxu1 }
 0x611   : > { %v930_v33 = vpop.f32.mrf.mxu2  ;;  %v943_v34 = vpop.f32.mrf.mxu3 }
 0x613   : > { %v875_v37 = vpop.f32.mrf.mxu0  ;;  %v888_v38 = vpop.f32.mrf.mxu1 }
 0x614   : > { %v892_v39 = vadd.f32 %v875_v37, %v837_v35  ;;  %v893_v40 = vadd.f32 %v888_v38, %v838_v36 }
 0x616   : > { %v947_v41 = vadd.f32 %v930_v33, %v892_v39  ;;  %v948_v42 = vadd.f32 %v943_v34, %v893_v40 }
 0x618   : > { %949 = vst [vmem:[%s234_s17] sm:$0xff] %v947_v41 }
 0x619   : > { %950 = vst [vmem:[%s234_s17 + $0x8] sm:$0xff] %v948_v42  ;;  %v932_v43 = vpop.f32.mrf.mxu2  ;;  %v945_v44 = vpop.f32.mrf.mxu3 }
 0x61a   : > { %1222 = shalt.err (!%p1219_p8)
}
 0x61b   : > { %1088 = dma.vmem_to_hbm [thread:$0]  (%p1345_p5), %s966_s23, 256, %s968_s25, %s952_s22   ;;  %v877_v45 = vpop.f32.mrf.mxu0  ;;  %v890_v46 = vpop.f32.mrf.mxu1 }
 0x61c PF: > { %p1100_p9 = scmp.ge.s32.totalorder %s1261_s21, 2  ;;  %s979_s11 = sand.u32 1, %s1249_s18  }
 0x61d   : > { %s980_s12 = scalar_lea.sflag [#allocation4], %s979_s11 }
 0x61e   : > { %p1095_p10 = pnand %p1100_p9, %p1349_p6 }
 0x620   : > { %p1096_p11 = pneg %p1095_p10 }
 0x622   : > { %1244 = dma.done.wait (%p1096_p11), %s980_s12, 256  }
 0x623   : > { %1246 = vsyncadd (%p1096_p11), %s980_s12, 4294967040  ;;  %p16_p5 = scmp.ge.s32.totalorder %s1332_s24, 4   ;;  %s1560_s18 = smov %s1253_s19 }
 0x624   : > { %s1561_s19 = smov %s1257_s20  ;;  %s1562_s20 = smov %s1343_s27 }
 0x625   : > { %s1563_s21 = smov %s1332_s24  ;;  %18 = sbr.rel (!%p16_p5) target bundleno = 4 (0x4), region = 83 }
 0x62a   :  { %986 = vsyncpa [#allocation3], 1 }
 0x62b   :  { %988 = vsyncpa [#allocation3 + $0x1], 1 }
 0x62c   :  { %989 = vsyncpa [#allocation4], 1 }
 0x62d   :  { %991 = vsyncpa [#allocation4 + $0x1], 1 }

</bundles_post_ra>
